<compile_context>
chip_gen: v5e
topology: v5e:2x2
jax: 0.10.0
libtpu: 0.0.40
codegen_flags: <defaults>
</compile_context>

<pallas_src>
import math
import functools

import jax
import jax.numpy as jnp
from jax.experimental import pallas as pl
from jax.experimental.pallas import tpu as pltpu


# ----------------------------------------------------------------------------
# Kernel: full encoder stack.  grid = (batch, layer); one batch element / block.
# ----------------------------------------------------------------------------

def encoder_stack_kernel(x_ref, mbias_ref,
                         wqkv_ref, bqkv_ref, wo_ref, bo_ref,
                         ln1_g_ref, ln1_b_ref,
                         w1_ref, b1_ref, w2_ref, b2_ref,
                         ln2_g_ref, ln2_b_ref,
                         out_ref,
                         act_sc, *, n_heads):
    l = pl.program_id(1)          # layer index (innermost, "arbitrary")
    eps = 1e-5

    # Load the embedded input only for the first layer; afterwards the running
    # activation lives in VMEM scratch (no HBM round-trip between layers).
    @pl.when(l == 0)
    def _load_input():
        act_sc[...] = x_ref[0]

    x = act_sc[...]               # (S, H) float32
    S, H = x.shape
    hd = H // n_heads

    # ---- fused Q/K/V projection: one (S,H) @ (H,3H) MXU pass -----------------
    # (Q columns/bias were pre-scaled by 1/sqrt(hd) in prepare_params.)
    qkv = jnp.dot(x.astype(jnp.bfloat16), wqkv_ref[0],
                  preferred_element_type=jnp.float32) + bqkv_ref[0]   # (S, 3H) f32

    # ---- head-major (n_heads, S, hd) views for batched attention -------------
    # TODO(synk): at realistic head_dim (>=128) do this split with pltpu.einshape
    # or at the BlockSpec level instead of per-head lane slices.
    q = jnp.stack([qkv[:, h * hd:(h + 1) * hd]
                   for h in range(n_heads)], axis=0).astype(jnp.bfloat16)
    k = jnp.stack([qkv[:, H + h * hd:H + (h + 1) * hd]
                   for h in range(n_heads)], axis=0).astype(jnp.bfloat16)
    v = jnp.stack([qkv[:, 2 * H + h * hd:2 * H + (h + 1) * hd]
                   for h in range(n_heads)], axis=0).astype(jnp.bfloat16)

    # ---- batched multi-head attention (no per-head matmul loop) --------------
    s = jnp.einsum('hqd,hkd->hqk', q, k,
                   preferred_element_type=jnp.float32)                # (nh, S, S) f32
    s = s + mbias_ref[...]                                            # additive mask bias
    s = s - jnp.max(s, axis=-1, keepdims=True)
    p = jnp.exp(s)
    p = p * pl.reciprocal(jnp.sum(p, axis=-1, keepdims=True), approx=True)

    o = jnp.einsum('hqk,hkd->hqd', p.astype(jnp.bfloat16), v,
                   preferred_element_type=jnp.float32)                # (nh, S, hd) f32
    ctx = jnp.concatenate([o[h] for h in range(n_heads)], axis=-1)    # (S, H) f32

    attn = jnp.dot(ctx.astype(jnp.bfloat16), wo_ref[0],
                   preferred_element_type=jnp.float32) + bo_ref[0]    # (S, H) f32

    # ---- residual + layernorm 1 (dropout = identity, eval mode) --------------
    y = x + attn
    mu = jnp.mean(y, axis=-1, keepdims=True)
    var = jnp.mean((y - mu) ** 2, axis=-1, keepdims=True)
    y = (y - mu) * jax.lax.rsqrt(var + eps) * ln1_g_ref[0] + ln1_b_ref[0]

    # ---- position-wise feedforward --------------------------------------------
    # TODO(synk): for realistic S/H/PF on v7x (64 MiB VMEM), tile the FFN over PF
    # and the attention over KV blocks (online softmax) instead of materializing
    # the whole (S,PF)/(nh,S,S) intermediates.
    f = jnp.dot(y.astype(jnp.bfloat16), w1_ref[0],
                preferred_element_type=jnp.float32) + b1_ref[0]
    f = jnp.maximum(f, 0.0)             # ReLU
    f = jnp.dot(f.astype(jnp.bfloat16), w2_ref[0],
                preferred_element_type=jnp.float32) + b2_ref[0]

    # ---- residual + layernorm 2 ------------------------------------------------
    z = y + f
    mu2 = jnp.mean(z, axis=-1, keepdims=True)
    var2 = jnp.mean((z - mu2) ** 2, axis=-1, keepdims=True)
    z = (z - mu2) * jax.lax.rsqrt(var2 + eps) * ln2_g_ref[0] + ln2_b_ref[0]

    act_sc[...] = z                     # carry activation to the next layer

    @pl.when(l == pl.num_programs(1) - 1)
    def _store_output():
        out_ref[0] = z                  # output block is revisited across l; HBM
                                        # writeback happens once, at block change.


# ----------------------------------------------------------------------------
# Wrappers
# ----------------------------------------------------------------------------

def _vmem_limit_bytes(S, H, PF, n_heads):
    """Generation-aware scoped-VMEM budget (~3/4 of physical VMEM)."""
    # bf16 per-layer weights, double-buffered by the pipeline over the layer axis.
    weights = 2 * 2 * 2 * (3 * H * H + H * H + 2 * H * PF)
    # f32 activations / intermediates for one (S, H) block (rough upper bound).
    acts = 4 * (10 * S * H + 4 * S * 3 * H + 3 * n_heads * S * S + 2 * S * PF)
    need = weights + acts + (8 << 20)
    try:
        cap = int(pltpu.get_tpu_info().vmem_capacity_bytes)
    except Exception:
        cap = 64 << 20                           # conservative fallback (v7x-sized)
    ceiling = max(32 << 20, (cap * 3) // 4)      # ~96 MiB on v5e/v6e, ~48 MiB on v7x
    return int(min(max(need, 32 << 20), ceiling))


def encoder_stack_call(x, mbias, w, *, n_heads):
    B, S, H = x.shape
    L = w["wqkv"].shape[0]
    PF = w["w1"].shape[2]

    act_map = lambda b, l: (b, 0, 0)     # per-batch blocks, constant across layers
    lyr_map = lambda b, l: (l, 0, 0)     # per-layer weight blocks (prefetched ahead)

    in_specs = [
        pl.BlockSpec((1, S, H), act_map),          # x (embedded input)
        pl.BlockSpec((1, 1, S), act_map),          # additive mask bias
        pl.BlockSpec((1, H, 3 * H), lyr_map),      # wqkv (bf16, Q pre-scaled)
        pl.BlockSpec((1, 1, 3 * H), lyr_map),      # bqkv (f32)
        pl.BlockSpec((1, H, H), lyr_map),          # wo (bf16)
        pl.BlockSpec((1, 1, H), lyr_map),          # bo
        pl.BlockSpec((1, 1, H), lyr_map),          # ln1 gamma
        pl.BlockSpec((1, 1, H), lyr_map),          # ln1 beta
        pl.BlockSpec((1, H, PF), lyr_map),         # w1 (bf16)
        pl.BlockSpec((1, 1, PF), lyr_map),         # b1
        pl.BlockSpec((1, PF, H), lyr_map),         # w2 (bf16)
        pl.BlockSpec((1, 1, H), lyr_map),          # b2
        pl.BlockSpec((1, 1, H), lyr_map),          # ln2 gamma
        pl.BlockSpec((1, 1, H), lyr_map),          # ln2 beta
    ]
    # TODO(synk): when B == 1 on v7x, add a second "parallel" axis (tile S into
    # row blocks) so both TensorCores are busy.
    return pl.pallas_call(
        functools.partial(encoder_stack_kernel, n_heads=n_heads),
        out_shape=jax.ShapeDtypeStruct((B, S, H), jnp.float32),
        grid=(B, L),
        in_specs=in_specs,
        out_specs=pl.BlockSpec((1, S, H), act_map),
        scratch_shapes=[pltpu.VMEM((S, H), jnp.float32)],   # resident activation
        compiler_params=pltpu.CompilerParams(
            dimension_semantics=("parallel", "arbitrary"),  # batch parallel, layers sequential
            vmem_limit_bytes=_vmem_limit_bytes(S, H, PF, n_heads)),
    )(x, mbias,
      w["wqkv"], w["bqkv"], w["wo"], w["bo"],
      w["ln1_g"], w["ln1_b"],
      w["w1"], w["b1"], w["w2"], w["b2"],
      w["ln2_g"], w["ln2_b"])


def encoder_forward(params, src, src_mask, *, n_heads):
    """src: [B, S] int32 token ids; src_mask: [B, 1, 1, S] (1 = keep, 0 = pad)."""
    B, S = src.shape
    H = params["tok_emb"].shape[1]

    # Embedding gathers + scale/pos combine: plain JAX (data-dependent lookup; the
    # elementwise combine fuses into the gather, so no dedicated kernel needed).
    tok = jnp.take(params["tok_emb"], src, axis=0)                    # (B, S, H)
    pos = params["pos_emb"][:S]                                       # (S, H)
    x = tok * jnp.float32(math.sqrt(H)) + pos[None, :, :]
    # TODO(synk): nn.Dropout omitted — eval/inference mode (identity).

    # Additive mask bias: 0 where keep, -1e10 where <pad>  (hoisted out of kernel).
    mbias = jnp.where(src_mask.reshape(B, 1, S) == 0,
                      jnp.float32(-1e10), jnp.float32(0.0)).astype(jnp.float32)

    return encoder_stack_call(x, mbias, params["stack"], n_heads=n_heads)


# ----------------------------------------------------------------------------
# Parameters: synthetic init (mirrors the PyTorch module's shapes) + kernel layout
# ----------------------------------------------------------------------------

def init_params(key, input_dim, hid_dim, n_layers, n_heads, pf_dim, max_length=1000):
    """PyTorch-shaped params: nn.Linear [out,in] is stored transposed as [in,out]."""
    def normal(k, shape, std=0.02):
        return jax.random.normal(k, shape, dtype=jnp.float32) * std

    keys = jax.random.split(key, 2 + n_layers)
    params = {
        "tok_emb": normal(keys[0], (input_dim, hid_dim)),
        "pos_emb": normal(keys[1], (max_length, hid_dim)),
        "layers": [],
    }
    for li in range(n_layers):
        lk = jax.random.split(keys[2 + li], 6)
        params["layers"].append({
            "wq": normal(lk[0], (hid_dim, hid_dim)), "bq": jnp.zeros((1, hid_dim), jnp.float32),
            "wk": normal(lk[1], (hid_dim, hid_dim)), "bk": jnp.zeros((1, hid_dim), jnp.float32),
            "wv": normal(lk[2], (hid_dim, hid_dim)), "bv": jnp.zeros((1, hid_dim), jnp.float32),
            "wo": normal(lk[3], (hid_dim, hid_dim)), "bo": jnp.zeros((1, hid_dim), jnp.float32),
            "ln1_g": jnp.ones((1, hid_dim), jnp.float32), "ln1_b": jnp.zeros((1, hid_dim), jnp.float32),
            "w1": normal(lk[4], (hid_dim, pf_dim)), "b1": jnp.zeros((1, pf_dim), jnp.float32),
            "w2": normal(lk[5], (pf_dim, hid_dim)), "b2": jnp.zeros((1, hid_dim), jnp.float32),
            "ln2_g": jnp.ones((1, hid_dim), jnp.float32), "ln2_b": jnp.zeros((1, hid_dim), jnp.float32),
        })
    return params


def prepare_params(params, *, n_heads):
    """Kernel layout: layer-stacked [L,...] weights, fused [H,3H] QKV (bf16) with
    the 1/sqrt(head_dim) attention scale folded into the Q columns/bias."""
    H = params["tok_emb"].shape[1]
    hd = H // n_heads
    inv_sqrt_hd = jnp.float32(1.0 / math.sqrt(hd))

    def stack(fn):
        return jnp.stack([fn(lp) for lp in params["layers"]], axis=0)

    prepared = {
        "tok_emb": params["tok_emb"],
        "pos_emb": params["pos_emb"],
        "stack": {
            "wqkv": stack(lambda lp: jnp.concatenate(
                [lp["wq"] * inv_sqrt_hd, lp["wk"], lp["wv"]], axis=1)).astype(jnp.bfloat16),  # (L,H,3H)
            "bqkv": stack(lambda lp: jnp.concatenate(
                [lp["bq"] * inv_sqrt_hd, lp["bk"], lp["bv"]], axis=1)),                       # (L,1,3H) f32
            "wo": stack(lambda lp: lp["wo"]).astype(jnp.bfloat16),       # (L,H,H)
            "bo": stack(lambda lp: lp["bo"]),                            # (L,1,H)
            "ln1_g": stack(lambda lp: lp["ln1_g"]),
            "ln1_b": stack(lambda lp: lp["ln1_b"]),
            "w1": stack(lambda lp: lp["w1"]).astype(jnp.bfloat16),       # (L,H,PF)
            "b1": stack(lambda lp: lp["b1"]),                            # (L,1,PF)
            "w2": stack(lambda lp: lp["w2"]).astype(jnp.bfloat16),       # (L,PF,H)
            "b2": stack(lambda lp: lp["b2"]),                            # (L,1,H)
            "ln2_g": stack(lambda lp: lp["ln2_g"]),
            "ln2_b": stack(lambda lp: lp["ln2_b"]),
        },
    }
    return prepared


# ----------------------------------------------------------------------------
# Main
# ----------------------------------------------------------------------------

if __name__ == "__main__":
    B, S = 2, 8
    input_dim, hid_dim, n_layers, n_heads, pf_dim = 100, 32, 2, 4, 64

    params = init_params(jax.random.PRNGKey(0),
                         input_dim, hid_dim, n_layers, n_heads, pf_dim,
                         max_length=1000)
    kparams = prepare_params(params, n_heads=n_heads)

    k_src, _ = jax.random.split(jax.random.PRNGKey(0))
    src = jax.random.randint(k_src, (B, S), 0, input_dim, dtype=jnp.int32)

    # src_mask: [B, 1, 1, S]; second sequence has 2 trailing <pad> tokens.
    src_mask = jnp.ones((B, 1, 1, S), dtype=jnp.int32)
    src_mask = src_mask.at[1, :, :, 6:].set(0)

    out = encoder_forward(kparams, src, src_mask, n_heads=n_heads)
    out = jax.block_until_ready(out)
    assert out.shape == (B, S, hid_dim) and out.dtype == jnp.float32
    assert bool(jnp.all(jnp.isfinite(out)))
    print("KERNEL_OK")
</pallas_src>

<mosaic_0001>
module attributes {stable_mosaic.version = 11 : i64} {
  func.func @encoder_stack_kernel(%arg0: i32, %arg1: i32, %arg2: memref<1x8x32xf32, #tpu.memory_space<vmem>>, %arg3: memref<1x1x8xf32, #tpu.memory_space<vmem>>, %arg4: memref<1x32x96xbf16, #tpu.memory_space<vmem>>, %arg5: memref<1x1x96xf32, #tpu.memory_space<vmem>>, %arg6: memref<1x32x32xbf16, #tpu.memory_space<vmem>>, %arg7: memref<1x1x32xf32, #tpu.memory_space<vmem>>, %arg8: memref<1x1x32xf32, #tpu.memory_space<vmem>>, %arg9: memref<1x1x32xf32, #tpu.memory_space<vmem>>, %arg10: memref<1x32x64xbf16, #tpu.memory_space<vmem>>, %arg11: memref<1x1x64xf32, #tpu.memory_space<vmem>>, %arg12: memref<1x64x32xbf16, #tpu.memory_space<vmem>>, %arg13: memref<1x1x32xf32, #tpu.memory_space<vmem>>, %arg14: memref<1x1x32xf32, #tpu.memory_space<vmem>>, %arg15: memref<1x1x32xf32, #tpu.memory_space<vmem>>, %arg16: memref<1x8x32xf32, #tpu.memory_space<vmem>>, %arg17: memref<8x32xf32, #tpu.memory_space<vmem>>) attributes {dimension_semantics = [#tpu.dimension_semantics<parallel>, #tpu.dimension_semantics<arbitrary>], iteration_bounds = array<i64: 2, 2>, scalar_prefetch = 0 : i64, scratch_operands = 1 : i64, tpu.core_type = #tpu.core_type<tc>, window_params = [{transform_indices = @transform_0, window_bounds = array<i64: 1, 8, 32>}, {transform_indices = @transform_1, window_bounds = array<i64: 1, 1, 8>}, {transform_indices = @transform_2, window_bounds = array<i64: 1, 32, 96>}, {transform_indices = @transform_3, window_bounds = array<i64: 1, 1, 96>}, {transform_indices = @transform_4, window_bounds = array<i64: 1, 32, 32>}, {transform_indices = @transform_5, window_bounds = array<i64: 1, 1, 32>}, {transform_indices = @transform_6, window_bounds = array<i64: 1, 1, 32>}, {transform_indices = @transform_7, window_bounds = array<i64: 1, 1, 32>}, {transform_indices = @transform_8, window_bounds = array<i64: 1, 32, 64>}, {transform_indices = @transform_9, window_bounds = array<i64: 1, 1, 64>}, {transform_indices = @transform_10, window_bounds = array<i64: 1, 64, 32>}, {transform_indices = @transform_11, window_bounds = array<i64: 1, 1, 32>}, {transform_indices = @transform_12, window_bounds = array<i64: 1, 1, 32>}, {transform_indices = @transform_13, window_bounds = array<i64: 1, 1, 32>}, {transform_indices = @transform_14, window_bounds = array<i64: 1, 8, 32>}]} {
    %c0_i32 = arith.constant 0 : i32
    %0 = arith.cmpi eq, %arg1, %c0_i32 : i32
    %1 = arith.extui %0 : i1 to i32
    %c0_i32_0 = arith.constant 0 : i32
    %2 = arith.cmpi ne, %1, %c0_i32_0 : i32
    scf.if %2 {
      %c0_62 = arith.constant 0 : index
      %c0_63 = arith.constant 0 : index
      %c0_64 = arith.constant 0 : index
      %151 = vector.load %arg2[%c0_62, %c0_63, %c0_64] : memref<1x8x32xf32, #tpu.memory_space<vmem>>, vector<1x8x32xf32>
      %152 = vector.shape_cast %151 : vector<1x8x32xf32> to vector<8x32xf32>
      %c0_65 = arith.constant 0 : index
      %c0_66 = arith.constant 0 : index
      %153 = vector.load %arg17[%c0_65, %c0_66] : memref<8x32xf32, #tpu.memory_space<vmem>>, vector<8x32xf32>
      tpu.vector_store %arg17[%c0_65, %c0_66], %152 {strides = array<i32>} : memref<8x32xf32, #tpu.memory_space<vmem>>, vector<8x32xf32>,
    } else {
    }
    %c0 = arith.constant 0 : index
    %c0_1 = arith.constant 0 : index
    %3 = vector.load %arg17[%c0, %c0_1] : memref<8x32xf32, #tpu.memory_space<vmem>>, vector<8x32xf32>
    %4 = arith.truncf %3 : vector<8x32xf32> to vector<8x32xbf16>
    %c0_2 = arith.constant 0 : index
    %c0_3 = arith.constant 0 : index
    %c0_4 = arith.constant 0 : index
    %5 = vector.load %arg4[%c0_2, %c0_3, %c0_4] : memref<1x32x96xbf16, #tpu.memory_space<vmem>>, vector<1x32x96xbf16>
    %6 = vector.shape_cast %5 : vector<1x32x96xbf16> to vector<32x96xbf16>
    %cst = arith.constant dense<0.000000e+00> : vector<8x96xf32>
    %7 = tpu.matmul %4, %6, %cst {dimension_numbers = #tpu.dot_dimension_numbers<[1], [0], [0], [1], [0, 0, 1, 1], [], []>} : vector<8x32xbf16>, vector<32x96xbf16>, vector<8x96xf32> -> vector<8x96xf32>
    %c0_5 = arith.constant 0 : index
    %c0_6 = arith.constant 0 : index
    %c0_7 = arith.constant 0 : index
    %8 = vector.load %arg5[%c0_5, %c0_6, %c0_7] : memref<1x1x96xf32, #tpu.memory_space<vmem>>, vector<1x1x96xf32>
    %9 = vector.shape_cast %8 : vector<1x1x96xf32> to vector<1x96xf32>
    %10 = vector.broadcast %9 : vector<1x96xf32> to vector<8x96xf32>
    %11 = arith.addf %7, %10 : vector<8x96xf32>
    %12 = vector.extract_strided_slice %11 {offsets = [0, 0], sizes = [8, 8], strides = [1, 1]} : vector<8x96xf32> to vector<8x8xf32>
    %13 = vector.extract_strided_slice %11 {offsets = [0, 8], sizes = [8, 8], strides = [1, 1]} : vector<8x96xf32> to vector<8x8xf32>
    %14 = vector.extract_strided_slice %11 {offsets = [0, 16], sizes = [8, 8], strides = [1, 1]} : vector<8x96xf32> to vector<8x8xf32>
    %15 = vector.extract_strided_slice %11 {offsets = [0, 24], sizes = [8, 8], strides = [1, 1]} : vector<8x96xf32> to vector<8x8xf32>
    %16 = vector.shape_cast %12 : vector<8x8xf32> to vector<1x8x8xf32>
    %17 = vector.shape_cast %13 : vector<8x8xf32> to vector<1x8x8xf32>
    %18 = vector.shape_cast %14 : vector<8x8xf32> to vector<1x8x8xf32>
    %19 = vector.shape_cast %15 : vector<8x8xf32> to vector<1x8x8xf32>
    %20 = tpu.concatenate %16, %17, %18, %19 in 0 : vector<1x8x8xf32>, vector<1x8x8xf32>, vector<1x8x8xf32>, vector<1x8x8xf32> -> vector<4x8x8xf32>
    %21 = arith.truncf %20 : vector<4x8x8xf32> to vector<4x8x8xbf16>
    %22 = vector.extract_strided_slice %11 {offsets = [0, 32], sizes = [8, 8], strides = [1, 1]} : vector<8x96xf32> to vector<8x8xf32>
    %23 = vector.extract_strided_slice %11 {offsets = [0, 40], sizes = [8, 8], strides = [1, 1]} : vector<8x96xf32> to vector<8x8xf32>
    %24 = vector.extract_strided_slice %11 {offsets = [0, 48], sizes = [8, 8], strides = [1, 1]} : vector<8x96xf32> to vector<8x8xf32>
    %25 = vector.extract_strided_slice %11 {offsets = [0, 56], sizes = [8, 8], strides = [1, 1]} : vector<8x96xf32> to vector<8x8xf32>
    %26 = vector.shape_cast %22 : vector<8x8xf32> to vector<1x8x8xf32>
    %27 = vector.shape_cast %23 : vector<8x8xf32> to vector<1x8x8xf32>
    %28 = vector.shape_cast %24 : vector<8x8xf32> to vector<1x8x8xf32>
    %29 = vector.shape_cast %25 : vector<8x8xf32> to vector<1x8x8xf32>
    %30 = tpu.concatenate %26, %27, %28, %29 in 0 : vector<1x8x8xf32>, vector<1x8x8xf32>, vector<1x8x8xf32>, vector<1x8x8xf32> -> vector<4x8x8xf32>
    %31 = arith.truncf %30 : vector<4x8x8xf32> to vector<4x8x8xbf16>
    %32 = vector.extract_strided_slice %11 {offsets = [0, 64], sizes = [8, 8], strides = [1, 1]} : vector<8x96xf32> to vector<8x8xf32>
    %33 = vector.extract_strided_slice %11 {offsets = [0, 72], sizes = [8, 8], strides = [1, 1]} : vector<8x96xf32> to vector<8x8xf32>
    %34 = vector.extract_strided_slice %11 {offsets = [0, 80], sizes = [8, 8], strides = [1, 1]} : vector<8x96xf32> to vector<8x8xf32>
    %35 = vector.extract_strided_slice %11 {offsets = [0, 88], sizes = [8, 8], strides = [1, 1]} : vector<8x96xf32> to vector<8x8xf32>
    %36 = vector.shape_cast %32 : vector<8x8xf32> to vector<1x8x8xf32>
    %37 = vector.shape_cast %33 : vector<8x8xf32> to vector<1x8x8xf32>
    %38 = vector.shape_cast %34 : vector<8x8xf32> to vector<1x8x8xf32>
    %39 = vector.shape_cast %35 : vector<8x8xf32> to vector<1x8x8xf32>
    %40 = tpu.concatenate %36, %37, %38, %39 in 0 : vector<1x8x8xf32>, vector<1x8x8xf32>, vector<1x8x8xf32>, vector<1x8x8xf32> -> vector<4x8x8xf32>
    %41 = arith.truncf %40 : vector<4x8x8xf32> to vector<4x8x8xbf16>
    "tpu.trace_start"() <{level = 10 : i32, message = "hqd,hkd->hqk"}> : () -> ()
    %cst_8 = arith.constant dense<0.000000e+00> : vector<4x8x8xf32>
    %42 = tpu.matmul %21, %31, %cst_8 {dimension_numbers = #tpu.dot_dimension_numbers<[2], [2], [1], [1], [0, 0, 0, 1, 1, 1], [0], [0]>} : vector<4x8x8xbf16>, vector<4x8x8xbf16>, vector<4x8x8xf32> -> vector<4x8x8xf32>
    "tpu.trace_stop"() : () -> ()
    %c0_9 = arith.constant 0 : index
    %c0_10 = arith.constant 0 : index
    %c0_11 = arith.constant 0 : index
    %43 = vector.load %arg3[%c0_9, %c0_10, %c0_11] : memref<1x1x8xf32, #tpu.memory_space<vmem>>, vector<1x1x8xf32>
    %44 = vector.broadcast %43 : vector<1x1x8xf32> to vector<4x8x8xf32>
    %45 = arith.addf %42, %44 : vector<4x8x8xf32>
    %cst_12 = arith.constant dense<0xFF800000> : vector<4x8xf32>
    %46 = vector.multi_reduction <maximumf>, %45, %cst_12 [2] : vector<4x8x8xf32> to vector<4x8xf32>
    %47 = vector.shape_cast %46 : vector<4x8xf32> to vector<4x8x1xf32>
    %48 = vector.broadcast %47 : vector<4x8x1xf32> to vector<4x8x8xf32>
    %49 = arith.subf %45, %48 : vector<4x8x8xf32>
    %50 = math.exp %49 : vector<4x8x8xf32>
    %cst_13 = arith.constant dense<0.000000e+00> : vector<4x8xf32>
    %51 = vector.multi_reduction <add>, %50, %cst_13 [2] : vector<4x8x8xf32> to vector<4x8xf32>
    %52 = vector.shape_cast %51 : vector<4x8xf32> to vector<4x8x1xf32>
    %53 = tpu.reciprocal %52 {approx = true} : vector<4x8x1xf32> -> vector<4x8x1xf32>
    %54 = vector.broadcast %53 : vector<4x8x1xf32> to vector<4x8x8xf32>
    %55 = arith.mulf %50, %54 : vector<4x8x8xf32>
    %56 = arith.truncf %55 : vector<4x8x8xf32> to vector<4x8x8xbf16>
    "tpu.trace_start"() <{level = 10 : i32, message = "hqk,hkd->hqd"}> : () -> ()
    %cst_14 = arith.constant dense<0.000000e+00> : vector<4x8x8xf32>
    %57 = tpu.matmul %56, %41, %cst_14 {dimension_numbers = #tpu.dot_dimension_numbers<[2], [1], [1], [2], [0, 0, 0, 1, 1, 2], [0], [0]>} : vector<4x8x8xbf16>, vector<4x8x8xbf16>, vector<4x8x8xf32> -> vector<4x8x8xf32>
    "tpu.trace_stop"() : () -> ()
    %58 = vector.extract_strided_slice %57 {offsets = [0, 0, 0], sizes = [1, 8, 8], strides = [1, 1, 1]} : vector<4x8x8xf32> to vector<1x8x8xf32>
    %59 = vector.shape_cast %58 : vector<1x8x8xf32> to vector<8x8xf32>
    %60 = vector.extract_strided_slice %57 {offsets = [1, 0, 0], sizes = [1, 8, 8], strides = [1, 1, 1]} : vector<4x8x8xf32> to vector<1x8x8xf32>
    %61 = vector.shape_cast %60 : vector<1x8x8xf32> to vector<8x8xf32>
    %62 = vector.extract_strided_slice %57 {offsets = [2, 0, 0], sizes = [1, 8, 8], strides = [1, 1, 1]} : vector<4x8x8xf32> to vector<1x8x8xf32>
    %63 = vector.shape_cast %62 : vector<1x8x8xf32> to vector<8x8xf32>
    %64 = vector.extract_strided_slice %57 {offsets = [3, 0, 0], sizes = [1, 8, 8], strides = [1, 1, 1]} : vector<4x8x8xf32> to vector<1x8x8xf32>
    %65 = vector.shape_cast %64 : vector<1x8x8xf32> to vector<8x8xf32>
    %66 = tpu.concatenate %59, %61, %63, %65 in 1 : vector<8x8xf32>, vector<8x8xf32>, vector<8x8xf32>, vector<8x8xf32> -> vector<8x32xf32>
    %67 = arith.truncf %66 : vector<8x32xf32> to vector<8x32xbf16>
    %c0_15 = arith.constant 0 : index
    %c0_16 = arith.constant 0 : index
    %c0_17 = arith.constant 0 : index
    %68 = vector.load %arg6[%c0_15, %c0_16, %c0_17] : memref<1x32x32xbf16, #tpu.memory_space<vmem>>, vector<1x32x32xbf16>
    %69 = vector.shape_cast %68 : vector<1x32x32xbf16> to vector<32x32xbf16>
    %cst_18 = arith.constant dense<0.000000e+00> : vector<8x32xf32>
    %70 = tpu.matmul %67, %69, %cst_18 {dimension_numbers = #tpu.dot_dimension_numbers<[1], [0], [0], [1], [0, 0, 1, 1], [], []>} : vector<8x32xbf16>, vector<32x32xbf16>, vector<8x32xf32> -> vector<8x32xf32>
    %c0_19 = arith.constant 0 : index
    %c0_20 = arith.constant 0 : index
    %c0_21 = arith.constant 0 : index
    %71 = vector.load %arg7[%c0_19, %c0_20, %c0_21] : memref<1x1x32xf32, #tpu.memory_space<vmem>>, vector<1x1x32xf32>
    %72 = vector.shape_cast %71 : vector<1x1x32xf32> to vector<1x32xf32>
    %73 = vector.broadcast %72 : vector<1x32xf32> to vector<8x32xf32>
    %74 = arith.addf %70, %73 : vector<8x32xf32>
    %75 = arith.addf %3, %74 : vector<8x32xf32>
    %cst_22 = arith.constant dense<0.000000e+00> : vector<8xf32>
    %76 = vector.multi_reduction <add>, %75, %cst_22 [1] : vector<8x32xf32> to vector<8xf32>
    %77 = vector.shape_cast %76 : vector<8xf32> to vector<8x1xf32>
    %cst_23 = arith.constant 3.200000e+01 : f32
    %78 = vector.broadcast %cst_23 : f32 to vector<8x1xf32>
    %79 = arith.divf %77, %78 : vector<8x1xf32>
    %80 = vector.broadcast %79 : vector<8x1xf32> to vector<8x32xf32>
    %81 = arith.subf %75, %80 : vector<8x32xf32>
    %82 = arith.mulf %81, %81 : vector<8x32xf32>
    %cst_24 = arith.constant dense<0.000000e+00> : vector<8xf32>
    %83 = vector.multi_reduction <add>, %82, %cst_24 [1] : vector<8x32xf32> to vector<8xf32>
    %84 = vector.shape_cast %83 : vector<8xf32> to vector<8x1xf32>
    %cst_25 = arith.constant 3.200000e+01 : f32
    %85 = vector.broadcast %cst_25 : f32 to vector<8x1xf32>
    %86 = arith.divf %84, %85 : vector<8x1xf32>
    %87 = vector.broadcast %79 : vector<8x1xf32> to vector<8x32xf32>
    %88 = arith.subf %75, %87 : vector<8x32xf32>
    %cst_26 = arith.constant 9.99999974E-6 : f32
    %89 = vector.broadcast %cst_26 : f32 to vector<8x1xf32>
    %90 = arith.addf %86, %89 : vector<8x1xf32>
    %91 = math.rsqrt %90 : vector<8x1xf32>
    %92 = vector.broadcast %91 : vector<8x1xf32> to vector<8x32xf32>
    %93 = arith.mulf %88, %92 : vector<8x32xf32>
    %c0_27 = arith.constant 0 : index
    %c0_28 = arith.constant 0 : index
    %c0_29 = arith.constant 0 : index
    %94 = vector.load %arg8[%c0_27, %c0_28, %c0_29] : memref<1x1x32xf32, #tpu.memory_space<vmem>>, vector<1x1x32xf32>
    %95 = vector.shape_cast %94 : vector<1x1x32xf32> to vector<1x32xf32>
    %96 = vector.broadcast %95 : vector<1x32xf32> to vector<8x32xf32>
    %97 = arith.mulf %93, %96 : vector<8x32xf32>
    %c0_30 = arith.constant 0 : index
    %c0_31 = arith.constant 0 : index
    %c0_32 = arith.constant 0 : index
    %98 = vector.load %arg9[%c0_30, %c0_31, %c0_32] : memref<1x1x32xf32, #tpu.memory_space<vmem>>, vector<1x1x32xf32>
    %99 = vector.shape_cast %98 : vector<1x1x32xf32> to vector<1x32xf32>
    %100 = vector.broadcast %99 : vector<1x32xf32> to vector<8x32xf32>
    %101 = arith.addf %97, %100 : vector<8x32xf32>
    %102 = arith.truncf %101 : vector<8x32xf32> to vector<8x32xbf16>
    %c0_33 = arith.constant 0 : index
    %c0_34 = arith.constant 0 : index
    %c0_35 = arith.constant 0 : index
    %103 = vector.load %arg10[%c0_33, %c0_34, %c0_35] : memref<1x32x64xbf16, #tpu.memory_space<vmem>>, vector<1x32x64xbf16>
    %104 = vector.shape_cast %103 : vector<1x32x64xbf16> to vector<32x64xbf16>
    %cst_36 = arith.constant dense<0.000000e+00> : vector<8x64xf32>
    %105 = tpu.matmul %102, %104, %cst_36 {dimension_numbers = #tpu.dot_dimension_numbers<[1], [0], [0], [1], [0, 0, 1, 1], [], []>} : vector<8x32xbf16>, vector<32x64xbf16>, vector<8x64xf32> -> vector<8x64xf32>
    %c0_37 = arith.constant 0 : index
    %c0_38 = arith.constant 0 : index
    %c0_39 = arith.constant 0 : index
    %106 = vector.load %arg11[%c0_37, %c0_38, %c0_39] : memref<1x1x64xf32, #tpu.memory_space<vmem>>, vector<1x1x64xf32>
    %107 = vector.shape_cast %106 : vector<1x1x64xf32> to vector<1x64xf32>
    %108 = vector.broadcast %107 : vector<1x64xf32> to vector<8x64xf32>
    %109 = arith.addf %105, %108 : vector<8x64xf32>
    %cst_40 = arith.constant 0.000000e+00 : f32
    %110 = vector.broadcast %cst_40 : f32 to vector<8x64xf32>
    %111 = arith.maximumf %109, %110 : vector<8x64xf32>
    %112 = arith.truncf %111 : vector<8x64xf32> to vector<8x64xbf16>
    %c0_41 = arith.constant 0 : index
    %c0_42 = arith.constant 0 : index
    %c0_43 = arith.constant 0 : index
    %113 = vector.load %arg12[%c0_41, %c0_42, %c0_43] : memref<1x64x32xbf16, #tpu.memory_space<vmem>>, vector<1x64x32xbf16>
    %114 = vector.shape_cast %113 : vector<1x64x32xbf16> to vector<64x32xbf16>
    %cst_44 = arith.constant dense<0.000000e+00> : vector<8x32xf32>
    %115 = tpu.matmul %112, %114, %cst_44 {dimension_numbers = #tpu.dot_dimension_numbers<[1], [0], [0], [1], [0, 0, 1, 1], [], []>} : vector<8x64xbf16>, vector<64x32xbf16>, vector<8x32xf32> -> vector<8x32xf32>
    %c0_45 = arith.constant 0 : index
    %c0_46 = arith.constant 0 : index
    %c0_47 = arith.constant 0 : index
    %116 = vector.load %arg13[%c0_45, %c0_46, %c0_47] : memref<1x1x32xf32, #tpu.memory_space<vmem>>, vector<1x1x32xf32>
    %117 = vector.shape_cast %116 : vector<1x1x32xf32> to vector<1x32xf32>
    %118 = vector.broadcast %117 : vector<1x32xf32> to vector<8x32xf32>
    %119 = arith.addf %115, %118 : vector<8x32xf32>
    %120 = arith.addf %101, %119 : vector<8x32xf32>
    %cst_48 = arith.constant dense<0.000000e+00> : vector<8xf32>
    %121 = vector.multi_reduction <add>, %120, %cst_48 [1] : vector<8x32xf32> to vector<8xf32>
    %122 = vector.shape_cast %121 : vector<8xf32> to vector<8x1xf32>
    %cst_49 = arith.constant 3.200000e+01 : f32
    %123 = vector.broadcast %cst_49 : f32 to vector<8x1xf32>
    %124 = arith.divf %122, %123 : vector<8x1xf32>
    %125 = vector.broadcast %124 : vector<8x1xf32> to vector<8x32xf32>
    %126 = arith.subf %120, %125 : vector<8x32xf32>
    %127 = arith.mulf %126, %126 : vector<8x32xf32>
    %cst_50 = arith.constant dense<0.000000e+00> : vector<8xf32>
    %128 = vector.multi_reduction <add>, %127, %cst_50 [1] : vector<8x32xf32> to vector<8xf32>
    %129 = vector.shape_cast %128 : vector<8xf32> to vector<8x1xf32>
    %cst_51 = arith.constant 3.200000e+01 : f32
    %130 = vector.broadcast %cst_51 : f32 to vector<8x1xf32>
    %131 = arith.divf %129, %130 : vector<8x1xf32>
    %132 = vector.broadcast %124 : vector<8x1xf32> to vector<8x32xf32>
    %133 = arith.subf %120, %132 : vector<8x32xf32>
    %cst_52 = arith.constant 9.99999974E-6 : f32
    %134 = vector.broadcast %cst_52 : f32 to vector<8x1xf32>
    %135 = arith.addf %131, %134 : vector<8x1xf32>
    %136 = math.rsqrt %135 : vector<8x1xf32>
    %137 = vector.broadcast %136 : vector<8x1xf32> to vector<8x32xf32>
    %138 = arith.mulf %133, %137 : vector<8x32xf32>
    %c0_53 = arith.constant 0 : index
    %c0_54 = arith.constant 0 : index
    %c0_55 = arith.constant 0 : index
    %139 = vector.load %arg14[%c0_53, %c0_54, %c0_55] : memref<1x1x32xf32, #tpu.memory_space<vmem>>, vector<1x1x32xf32>
    %140 = vector.shape_cast %139 : vector<1x1x32xf32> to vector<1x32xf32>
    %141 = vector.broadcast %140 : vector<1x32xf32> to vector<8x32xf32>
    %142 = arith.mulf %138, %141 : vector<8x32xf32>
    %c0_56 = arith.constant 0 : index
    %c0_57 = arith.constant 0 : index
    %c0_58 = arith.constant 0 : index
    %143 = vector.load %arg15[%c0_56, %c0_57, %c0_58] : memref<1x1x32xf32, #tpu.memory_space<vmem>>, vector<1x1x32xf32>
    %144 = vector.shape_cast %143 : vector<1x1x32xf32> to vector<1x32xf32>
    %145 = vector.broadcast %144 : vector<1x32xf32> to vector<8x32xf32>
    %146 = arith.addf %142, %145 : vector<8x32xf32>
    %c0_59 = arith.constant 0 : index
    %c0_60 = arith.constant 0 : index
    %147 = vector.load %arg17[%c0_59, %c0_60] : memref<8x32xf32, #tpu.memory_space<vmem>>, vector<8x32xf32>
    tpu.vector_store %arg17[%c0_59, %c0_60], %146 {strides = array<i32>} : memref<8x32xf32, #tpu.memory_space<vmem>>, vector<8x32xf32>,
    %c1_i32 = arith.constant 1 : i32
    %148 = arith.cmpi eq, %arg1, %c1_i32 : i32
    %149 = arith.extui %148 : i1 to i32
    %c0_i32_61 = arith.constant 0 : i32
    %150 = arith.cmpi ne, %149, %c0_i32_61 : i32
    scf.if %150 {
      %c0_62 = arith.constant 0 : index
      %c0_63 = arith.constant 0 : index
      %c0_64 = arith.constant 0 : index
      %151 = vector.load %arg16[%c0_62, %c0_63, %c0_64] : memref<1x8x32xf32, #tpu.memory_space<vmem>>, vector<1x8x32xf32>
      %152 = vector.shape_cast %151 : vector<1x8x32xf32> to vector<8x32xf32>
      %153 = vector.shape_cast %146 : vector<8x32xf32> to vector<1x8x32xf32>
      tpu.vector_store %arg16[%c0_62, %c0_63, %c0_64], %153 {strides = array<i32>} : memref<1x8x32xf32, #tpu.memory_space<vmem>>, vector<1x8x32xf32>,
    } else {
    }
    return
  }
  func.func @transform_0(%arg0: i32, %arg1: i32) -> (i32, i32, i32) {
    %c0_i32 = arith.constant 0 : i32
    %c0_i32_0 = arith.constant 0 : i32
    %c0_i32_1 = arith.constant 0 : i32
    return %arg0, %c0_i32, %c0_i32_0 : i32, i32, i32
  }
  func.func @transform_1(%arg0: i32, %arg1: i32) -> (i32, i32, i32) {
    %c0_i32 = arith.constant 0 : i32
    %c0_i32_0 = arith.constant 0 : i32
    %c0_i32_1 = arith.constant 0 : i32
    return %arg0, %c0_i32, %c0_i32_0 : i32, i32, i32
  }
  func.func @transform_2(%arg0: i32, %arg1: i32) -> (i32, i32, i32) {
    %c0_i32 = arith.constant 0 : i32
    %c0_i32_0 = arith.constant 0 : i32
    %c0_i32_1 = arith.constant 0 : i32
    return %arg1, %c0_i32, %c0_i32_0 : i32, i32, i32
  }
  func.func @transform_3(%arg0: i32, %arg1: i32) -> (i32, i32, i32) {
    %c0_i32 = arith.constant 0 : i32
    %c0_i32_0 = arith.constant 0 : i32
    %c0_i32_1 = arith.constant 0 : i32
    return %arg1, %c0_i32, %c0_i32_0 : i32, i32, i32
  }
  func.func @transform_4(%arg0: i32, %arg1: i32) -> (i32, i32, i32) {
    %c0_i32 = arith.constant 0 : i32
    %c0_i32_0 = arith.constant 0 : i32
    %c0_i32_1 = arith.constant 0 : i32
    return %arg1, %c0_i32, %c0_i32_0 : i32, i32, i32
  }
  func.func @transform_5(%arg0: i32, %arg1: i32) -> (i32, i32, i32) {
    %c0_i32 = arith.constant 0 : i32
    %c0_i32_0 = arith.constant 0 : i32
    %c0_i32_1 = arith.constant 0 : i32
    return %arg1, %c0_i32, %c0_i32_0 : i32, i32, i32
  }
  func.func @transform_6(%arg0: i32, %arg1: i32) -> (i32, i32, i32) {
    %c0_i32 = arith.constant 0 : i32
    %c0_i32_0 = arith.constant 0 : i32
    %c0_i32_1 = arith.constant 0 : i32
    return %arg1, %c0_i32, %c0_i32_0 : i32, i32, i32
  }
  func.func @transform_7(%arg0: i32, %arg1: i32) -> (i32, i32, i32) {
    %c0_i32 = arith.constant 0 : i32
    %c0_i32_0 = arith.constant 0 : i32
    %c0_i32_1 = arith.constant 0 : i32
    return %arg1, %c0_i32, %c0_i32_0 : i32, i32, i32
  }
  func.func @transform_8(%arg0: i32, %arg1: i32) -> (i32, i32, i32) {
    %c0_i32 = arith.constant 0 : i32
    %c0_i32_0 = arith.constant 0 : i32
    %c0_i32_1 = arith.constant 0 : i32
    return %arg1, %c0_i32, %c0_i32_0 : i32, i32, i32
  }
  func.func @transform_9(%arg0: i32, %arg1: i32) -> (i32, i32, i32) {
    %c0_i32 = arith.constant 0 : i32
    %c0_i32_0 = arith.constant 0 : i32
    %c0_i32_1 = arith.constant 0 : i32
    return %arg1, %c0_i32, %c0_i32_0 : i32, i32, i32
  }
  func.func @transform_10(%arg0: i32, %arg1: i32) -> (i32, i32, i32) {
    %c0_i32 = arith.constant 0 : i32
    %c0_i32_0 = arith.constant 0 : i32
    %c0_i32_1 = arith.constant 0 : i32
    return %arg1, %c0_i32, %c0_i32_0 : i32, i32, i32
  }
  func.func @transform_11(%arg0: i32, %arg1: i32) -> (i32, i32, i32) {
    %c0_i32 = arith.constant 0 : i32
    %c0_i32_0 = arith.constant 0 : i32
    %c0_i32_1 = arith.constant 0 : i32
    return %arg1, %c0_i32, %c0_i32_0 : i32, i32, i32
  }
  func.func @transform_12(%arg0: i32, %arg1: i32) -> (i32, i32, i32) {
    %c0_i32 = arith.constant 0 : i32
    %c0_i32_0 = arith.constant 0 : i32
    %c0_i32_1 = arith.constant 0 : i32
    return %arg1, %c0_i32, %c0_i32_0 : i32, i32, i32
  }
  func.func @transform_13(%arg0: i32, %arg1: i32) -> (i32, i32, i32) {
    %c0_i32 = arith.constant 0 : i32
    %c0_i32_0 = arith.constant 0 : i32
    %c0_i32_1 = arith.constant 0 : i32
    return %arg1, %c0_i32, %c0_i32_0 : i32, i32, i32
  }
  func.func @transform_14(%arg0: i32, %arg1: i32) -> (i32, i32, i32) {
    %c0_i32 = arith.constant 0 : i32
    %c0_i32_0 = arith.constant 0 : i32
    %c0_i32_1 = arith.constant 0 : i32
    return %arg0, %c0_i32, %c0_i32_0 : i32, i32, i32
  }
}

</mosaic_0001>

<bundles_post_ra>
// kernel: tpu_custom_call.1
= control target key start
LH: loop header
LB: loop body
LE: loop exit
PB: predicated region body
PF: predicated region fallthrough
CT: control target
= control target key end

     0   :  { %s2601_s0 = inlined_call_operand.hbm [shape: f32[2,8,32], index: 0, kind: input, shape index: {}]   ;;  %s2602_s1 = inlined_call_operand.hbm [shape: f32[2,1,8], index: 1, kind: input, shape index: {}]   ;;  %s2603_s2 = inlined_call_operand.vmem [shape: bf16[2,32,96], index: 2, kind: input, shape index: {}]   ;;  %s2604_s3 = inlined_call_operand.hbm [shape: f32[2,1,96], index: 3, kind: input, shape index: {}]   ;;  %s2605_s4 = inlined_call_operand.vmem [shape: bf16[2,32,32], index: 4, kind: input, shape index: {}]   ;;  %s2606_s5 = inlined_call_operand.vmem [shape: f32[2,1,32], index: 5, kind: input, shape index: {}]   ;;  %s2607_s6 = inlined_call_operand.vmem [shape: f32[2,1,32], index: 6, kind: input, shape index: {}]   ;;  %s2608_s7 = inlined_call_operand.hbm [shape: f32[2,1,32], index: 7, kind: input, shape index: {}]   ;;  %s2609_s8 = inlined_call_operand.vmem [shape: bf16[2,32,64], index: 8, kind: input, shape index: {}]   ;;  %s2610_s9 = inlined_call_operand.vmem [shape: f32[2,1,64], index: 9, kind: input, shape index: {}]   ;;  %s2611_s10 = inlined_call_operand.vmem [shape: bf16[2,64,32], index: 10, kind: input, shape index: {}]   ;;  %s2612_s11 = inlined_call_operand.vmem [shape: f32[2,1,32], index: 11, kind: input, shape index: {}]   ;;  %s2613_s12 = inlined_call_operand.vmem [shape: f32[2,1,32], index: 12, kind: input, shape index: {}]   ;;  %s2614_s13 = inlined_call_operand.hbm [shape: f32[2,1,32], index: 13, kind: input, shape index: {}]   ;;  %s2615_s14 = inlined_call_operand.hbm [shape: f32[2,8,32], index: 14, kind: output, shape index: {}]  }
   0x1   :  { %2633 = sst [smem:[#allocation32_spill]] %s2601_s0 }
   0x2   :  { %2634 = sst [smem:[#allocation33_spill]] %s2602_s1 }
   0x3   :  { %2635 = sst [smem:[#allocation34_spill]] %s2603_s2 }
   0x4   :  { %2636 = sst [smem:[#allocation35_spill]] %s2604_s3 }
   0x5   :  { %2637 = sst [smem:[#allocation36_spill]] %s2605_s4 }
   0x6   :  { %2638 = sst [smem:[#allocation37_spill]] %s2606_s5 }
   0x7   :  { %2639 = sst [smem:[#allocation38_spill]] %s2607_s6 }
   0x8   :  { %2640 = sst [smem:[#allocation39_spill]] %s2608_s7 }
   0x9   :  { %2641 = sst [smem:[#allocation40_spill]] %s2609_s8 }
   0xa   :  { %2642 = sst [smem:[#allocation41_spill]] %s2610_s9 }
   0xb   :  { %2643 = sst [smem:[#allocation42_spill]] %s2611_s10 }
   0xc   :  { %2644 = sst [smem:[#allocation43_spill]] %s2612_s11 }
   0xd   :  { %2645 = sst [smem:[#allocation44_spill]] %s2613_s12 }
   0xe   :  { %2646 = sst [smem:[#allocation45_spill]] %s2614_s13 }
   0xf   :  { %2647 = sst [smem:[#allocation46_spill]] %s2615_s14 }
  0x10   :  { %19 = vsyncpa [#allocation4], 0 }
  0x11   :  { %21 = vsyncpa [#allocation4 + $0x1], 0 }
  0x12   :  { %22 = vsyncpa [#allocation7], 0 }
  0x13   :  { %24 = vsyncpa [#allocation7 + $0x1], 0 }
  0x14   :  { %25 = vsyncpa [#allocation10], 0 }
  0x15   :  { %27 = vsyncpa [#allocation10 + $0x1], 0 }
  0x16   :  { %28 = vsyncpa [#allocation5], 0 }
  0x17   :  { %30 = vsyncpa [#allocation5 + $0x1], 0  ;;  %s2182_s29 = smov 0   ;;  %s2184_s30 = smov 0  }
  0x18   :  { %s2186_s15 = smov 0   ;;  %s2188_s16 = smov 0  }
  0x19   :  { %s2190_s17 = smov 0   ;;  %s2192_s18 = smov 0  }
  0x1a   :  { %s2194_s19 = smov 0   ;;  %s2196_s20 = smov 0  }
  0x1b   :  { %s2198_s21 = smov 0   ;;  %s2200_s22 = smov 0  }
  0x1c   :  { %s2202_s23 = smov 0  }
  0x1d LB: > { %2648 = sst [smem:[#allocation18_spill]] %s2064_s15  ;;  %s2238_s24 = sadd.s32 4294967295, %s2096_s23   ;;  %s2096_s23 = sphi %s2202_s23, %s36_s23   ;;  %s2092_s22 = sphi %s2200_s22, %s2716_s22   ;;  %s2088_s21 = sphi %s2198_s21, %s2715_s21   ;;  %s2084_s20 = sphi %s2196_s20, %s2714_s20   ;;  %s2080_s19 = sphi %s2194_s19, %s2713_s19   ;;  %s2076_s18 = sphi %s2192_s18, %s2712_s18   ;;  %s2072_s17 = sphi %s2190_s17, %s2720_s17   ;;  %s2068_s16 = sphi %s2188_s16, %s2719_s16   ;;  %s2064_s15 = sphi %s2186_s15, %s2710_s15   ;;  %s2060_s30 = sphi %s2184_s30, %s2718_s30   ;;  %s2056_s29 = sphi %s2182_s29, %s2717_s29  }
  0x1e   : > { %2649 = sst [smem:[#allocation19_spill]] %s2068_s16  ;;  %s1562_s25 = sadd.s32 4294967294, %s2096_s23  }
  0x1f   : > { %2650 = sst [smem:[#allocation20_spill]] %s2076_s18  ;;  %p62_p0 = scmp.ne.s32.totalorder %s2076_s18, %s2072_s17 }
  0x20   : > { %2651 = sst [smem:[#allocation21_spill]] %s2080_s19  ;;  %p63_p1 = scmp.eq.s32.totalorder %s2096_s23, 0 }
  0x21   : > { %2652 = sst [smem:[#allocation22_spill]] %s2084_s20  ;;  %p68_p2 = scmp.ne.s32.totalorder %s2072_s17, %s2068_s16 }
  0x22   : > { %2653 = sst [smem:[#allocation23_spill]] %s2088_s21  ;;  %p69_p3 = scmp.eq.s32.totalorder %s2238_s24, 0 }
  0x23   : > { %2654 = sst [smem:[#allocation24_spill]] %s2092_s22  ;;  %p64_p4 = por %p63_p1, %p62_p0 }
  0x24   : > { %p430_p5 = scmp.eq.s32.totalorder %s2238_s24, 3  ;;  %p2254_p6 = por %p69_p3, %p68_p2 }
  0x25   : > { %p436_p7 = scmp.eq.s32.totalorder %s1562_s25, 3  ;;  %p2621_p10 = scmp.lt.s32.totalorder %s2096_s23, 4 }
  0x26   : > { %p2258_p8 = por %p430_p5, %p62_p0  ;;  %s2268_s16 = sand.u32 1, %s2076_s18  }
  0x27   : > { %p2262_p9 = por %p436_p7, %p68_p2  ;;  %p2273_p11 = pnand %p2621_p10, %p64_p4 }
  0x28   : > { %s2656_s26 = scalar_select %p2258_p8, 1, 0 }
  0x29   : > { %s2658_s27 = scalar_select %p2262_p9, 1, 0 }
  0x2a   : > { %2657 = sst [smem:[#allocation25_spill]] %s2656_s26  ;;  %s478_s14 = scalar_lea.vmem [#allocation6], %s2268_s16 }
  0x2b   : > { %2659 = sst [smem:[#allocation26_spill]] %s2658_s27  ;;  %s485_s11 = sshll.u32 %s478_s14, 4  ;;  %s486_s11 = int_to_ptr.vmem [resolvable:$true] %s485_s11 }
  0x2c   : > { %s2661_s1 = sld [smem:[#allocation33_spill]]  ;;  %p1567_p12 = scmp.ge.s32.totalorder %s2096_s23, 1 }
  0x2d   : > { %s2662_s10 = sand.u32 1, %s2096_s23   ;;  %p603_p13 = scmp.lt.s32.totalorder %s2096_s23, 5 }
  0x2e   : > { %s2285_s9 = scalar_lea.sflag [#allocation7], %s2662_s10  ;;  %s45_s26 = sadd.s32 1, %s2088_s21 }
  0x2f   : > { %p2291_p0 = pnand %p1567_p12, %p603_p13  ;;  %s133_s14 = sadd.s32 1, %s2064_s15 }
  0x30   : > { %p46_p2 = scmp.ge.s32.totalorder %s45_s26, 2  ;;  %p140_p4 = scmp.ne.s32.totalorder %s2064_s15, %s2060_s30 }
  0x31   : > { %p146_p5 = scmp.ne.s32.totalorder %s2060_s30, %s2056_s29  ;;  %s2302_s10 = sand.u32 1, %s2064_s15  }
  0x32   : > { %s481_s27 = scalar_lea.hbm %s2661_s1, %s2092_s22  ;;  %s2722_s26 = smov (%p46_p2, %s45_s26), 0 }
  0x33   : > { %s483_s12 = sshll.u32 %s481_s27, 4  ;;  %2664 = sst [smem:[#allocation27_spill]] %s2722_s26  ;;  %s484_s12 = int_to_ptr.hbm [resolvable:$true] %s483_s12 }
  0x34   : > { %1668 = dma.hbm_to_vmem [thread:$0]  (!%p2273_p11), %s484_s12, 16, %s486_s11, %s2285_s9  }
  0x35   : > { %s2665_s11 = sadd.s32 1, %s2092_s22  ;;  %s130_s12 = ssub.s32 %s2088_s21, %s2722_s26 }
  0x36   : > { %s2724_s11 = smov (!%p46_p2, %s2665_s11), %s2092_s22  ;;  %p142_p7 = por %p140_p4, %p63_p1 }
  0x37   : > { %p50_p12 = scmp.ge.s32.totalorder %s2724_s11, 2  ;;  %p131_p13 = scmp.eq.s32.totalorder %s130_s12, 0 }
  0x38   : > { %p2315_p10 = por %p146_p5, %p69_p3  ;;  %p2668_p9 = scmp.lt.s32.totalorder %s2096_s23, 4 }
  0x39   : > { %s2726_s11 = smov (%p50_p12, %s2724_s11), 0  ;;  %s2672_s7 = sld [smem:[#allocation39_spill]] }
  0x3a   : > { %s2666_s27 = scalar_select %p2315_p10, 1, 0 }
  0x3b   : > { %p2321_p8 = pnand %p2668_p9, %p142_p7  ;;  %2670 = sst [smem:[#allocation29_spill]] %s2726_s11 }
  0x3c   : > { %2667 = sst [smem:[#allocation28_spill]] %s2666_s27  ;;  %s52_s26 = ssub.s32 %s2092_s22, %s2726_s11 }
  0x3d   : > { %s2328_s1 = scalar_select %p131_p13, %s2064_s15, %s133_s14  }
  0x3e   : > { %p53_p1 = scmp.eq.s32.totalorder %s52_s26, 0  ;;  %s2673_s4 = sadd.s32 1, %s2076_s18 }
  0x3f   : > { %2671 = sst [smem:[#allocation30_spill]] %s2328_s1  ;;  %s543_s6 = scalar_lea.hbm %s2672_s7, %s2088_s21 }
  0x40   : > { %s2339_s2 = scalar_select %p53_p1, %s2076_s18, %s2673_s4  }
  0x41   : > { %s545_s5 = sshll.u32 %s543_s6, 4  ;;  %s540_s19 = scalar_lea.vmem [#allocation9], %s2302_s10  ;;  %s546_s5 = int_to_ptr.hbm [resolvable:$true] %s545_s5 }
  0x42   : > { %2674 = sst [smem:[#allocation31_spill]] %s2339_s2  ;;  %s547_s27 = sshll.u32 %s540_s19, 4  ;;  %s548_s27 = int_to_ptr.vmem [resolvable:$true] %s547_s27 }
  0x43   : > { %s2675_s14 = sand.u32 1, %s2096_s23   ;;  %s1565_s26 = sshll.u32 %s2268_s16, 3 }
  0x44   : > { %s538_s1 = scalar_lea.sflag [#allocation10], %s2675_s14  ;;  %s1566_s8 = sshll.u32 %s2092_s22, 3 }
  0x45   : > { %1674 = dma.hbm_to_vmem [thread:$0]  (!%p2321_p8), %s546_s5, 16, %s548_s27, %s538_s1  }
  0x46   : > { %s2676_s0 = sld [smem:[#allocation32_spill]]  ;;  %s460_s7 = scalar_lea.vmem [#allocation3], %s1565_s26 }
  0x47   : > { %s468_s11 = sshll.u32 %s460_s7, 4  ;;  %s457_s2 = scalar_lea.sflag [#allocation4], %s2268_s16  ;;  %s469_s11 = int_to_ptr.vmem [resolvable:$true] %s468_s11 }
  0x48   : > { %s2677_s3 = sld [smem:[#allocation35_spill]]  ;;  %s503_s22 = scalar_lea.vmem [#allocation8], %s2302_s10 }
  0x49   : > { %s510_s18 = sshll.u32 %s503_s22, 4  ;;  %s2678_s13 = sld [smem:[#allocation45_spill]]  ;;  %s511_s18 = int_to_ptr.vmem [resolvable:$true] %s510_s18 }
  0x4a   : > { %s591_s12 = scalar_lea.vmem [#allocation11], %s2302_s10 }
  0x4b   : > { %s598_s4 = sshll.u32 %s591_s12, 4  ;;  %s599_s4 = int_to_ptr.vmem [resolvable:$true] %s598_s4 }
  0x4c   : > { %s464_s6 = scalar_lea.hbm %s2676_s0, %s1566_s8 }
  0x4d   : > { %s466_s19 = sshll.u32 %s464_s6, 4  ;;  %s467_s19 = int_to_ptr.hbm [resolvable:$true] %s466_s19 }
  0x4e   : > { %1665 = dma.hbm_to_vmem [thread:$0]  (!%p2273_p11), %s467_s19, 128, %s469_s11, %s457_s2  }
  0x4f   : > { %s506_s14 = scalar_lea.hbm %s2677_s3, %s2088_s21  ;;  %s594_s8 = scalar_lea.hbm %s2678_s13, %s2088_s21 }
  0x50   : > { %s508_s15 = sshll.u32 %s506_s14, 4  ;;  %s596_s16 = sshll.u32 %s594_s8, 4  ;;  %s509_s15 = int_to_ptr.hbm [resolvable:$true] %s508_s15  ;;  %s597_s16 = int_to_ptr.hbm [resolvable:$true] %s596_s16 }
  0x51   : > { %1671 = dma.hbm_to_vmem [thread:$0]  (!%p2321_p8), %s509_s15, 16, %s511_s18, %s2285_s9  }
  0x52   : > { %1677 = dma.hbm_to_vmem [thread:$0]  (!%p2321_p8), %s597_s16, 16, %s599_s4, %s538_s1  }
  0x53   : > { %607 = sbr.rel (%p2291_p0) target bundleno = 2106 (0x83a), region = 76  ;;  %s2372_s2 = sand.u32 (!%p2291_p0), 1, %s2072_s17  }
  0x54   : > { %s2631_s9 = sshll.u32 (!%p2291_p0), %s2372_s2, 3  ;;  %s610_s15 = scalar_lea.sflag (!%p2291_p0), [#allocation4], %s2372_s2 }
  0x55   : > { %s2378_s18 = scalar_lea.vmem (!%p2291_p0), [#allocation3], %s2631_s9 }
  0x58   : > { %2035 = dma.done.wait (%p2254_p6), %s610_s15, 128  }
  0x59   : > { %2037 = vsyncadd (%p2254_p6), %s610_s15, 4294967168  ;;  %s619_s1 = sand.u32 1, %s2238_s24  }
  0x5a   : > { %s620_s22 = scalar_lea.sflag [#allocation7], %s619_s1 }
  0x5b   : > { %2039 = dma.done.wait (%p2254_p6), %s620_s22, 16  }
  0x5c   : > { %2041 = vsyncadd (%p2254_p6), %s620_s22, 4294967280  ;;  %s2391_s10 = sand.u32 1, %s2060_s30  }
  0x5d   : > { %2043 = dma.done.wait (%p2315_p10), %s620_s22, 16  }
  0x5e   : > { %2045 = vsyncadd (%p2315_p10), %s620_s22, 4294967280  ;;  %s638_s24 = scalar_lea.sflag [#allocation10], %s619_s1 }
  0x5f   : > { %2047 = dma.done.wait (%p2315_p10), %s638_s24, 32  }
  0x60   : > { %2049 = vsyncadd (%p2315_p10), %s638_s24, 4294967264  ;;  %s2680_s28 = sld [smem:[#allocation21_spill]]  ;;  %s2690_s11 = sshll.u32 %s2372_s2, 3 }
  0x61   : > { %s2682_s12 = sld [smem:[#allocation34_spill]] }
  0x62   : > { %s2683_s1 = sld [smem:[#allocation36_spill]] }
  0x63   : > { %s2685_s0 = sld [smem:[#allocation40_spill]] }
  0x64   : > { %s2686_s14 = sld [smem:[#allocation41_spill]] }
  0x65   : > { %s2687_s13 = sld [smem:[#allocation42_spill]] }
  0x66   : > { %p746_p3 = scmp.lt.s32.totalorder %s2680_s28, 1  ;;  %s2688_s21 = sld [smem:[#allocation43_spill]] }
  0x67   : > { %s2689_s25 = sld [smem:[#allocation44_spill]]  ;;  %p1578_p6 = scmp.ne.s32.totalorder %s2680_s28, 0 }
  0x68   : > { %s2405_s6 = scalar_select %p746_p3, %s2680_s28, 1 }
  0x6a   : > { %s1636_s19 = sshll.u32 %s2405_s6, 4  ;;  %s769_s26 = scalar_lea.vmem %s2686_s14, %s2405_s6 }
  0x6b   : > { %s750_s4 = scalar_lea.vmem %s2682_s12, %s1636_s19  ;;  %s2418_s22 = scalar_lea.vmem %s2683_s1, %s1636_s19 }
  0x6c   : > { %s2427_s3 = scalar_lea.vmem %s2685_s0, %s1636_s19  ;;  %s1639_s7 = sshll.u32 %s2405_s6, 5 }
  0x6d   : > { %s2437_s16 = scalar_lea.vmem %s2687_s13, %s1639_s7  ;;  %s777_s20 = scalar_lea.vmem %s2688_s21, %s2405_s6 }
  0x6e   : > { %s780_s9 = scalar_lea.vmem %s2689_s25, %s2405_s6  ;;  %s649_s0 = scalar_lea.vmem [#allocation11], %s2391_s10 }
  0x6f   : > { %s2450_s19 = scalar_lea.vmem [#allocation12], %s2690_s11  ;;  %785 = sbr.rel (%p1578_p6) target bundleno = 118 (0x76), region = 100 }
  0x74   : > { %v786_v0 = vld [vmem:[%s2378_s18] sm:$0xff]  ;;  %vm787_vm0 = vcmask 261120  }
  0x75   : > { %788 = vst.msk [vmem:[#allocation2] sm:$0xff] %vm787_vm0, %v786_v0 }
  0x76 PF: > { %v1641_v1 = vld [vmem:[%s750_s4 + $0x8] sm:$0xff]  ;;  %v1640_v2 = vld [vmem:[%s750_s4] sm:$0xff]  ;;  %vm811_vm1 = vcmask 261120   ;;  %s2691_s13 = scalar_lea.vmem [#allocation8], %s2391_s10  ;;  %s2098_s21 = smov 104   ;;  %vm851_vm2 = vcmask 64512  }
  0x77   : > { %821 = vmatpush.bf16.msra.mxu0 %v1641_v1  ;;  %v1781_v5 = vld [vmem:[%s2691_s13] ss:$0 sm:$0xff]  ;;  %s2099_s18 = smov 120   ;;  %s2100_s25 = smov 112   ;;  %vm996_vm3 = vcmask 1043456   ;;  %vm1089_vm4 = vcmask 130048  }
  0x78   : > { %s2101_s28 = smov 96   ;;  %s2692_s4 = scalar_lea.vmem [#allocation6], %s2372_s2  ;;  %vm1091_vm5 = vcmask 195584   ;;  %vm1245_vm10 = vcmask 523264  }
  0x79   : > { %v1782_v34 = vld [vmem:[%s2692_s4] ss:$0 sm:$0xff]  ;;  %s2102_s5 = smov 64   ;;  %s2103_s27 = smov 16  }
  0x7a   : > { %s2104_s14 = smov 8   ;;  %s2105_s7 = smov 24  }
  0x7b   : > { %822 = vmatpush.bf16.msra.mxu0 %v1640_v2  ;;  %s2693_s15 = sld [smem:[#allocation37_spill]]  ;;  %s2697_s11 = scalar_lea.vmem [#allocation9], %s2391_s10 }
  0x7c   : > { %v2454_v3 = vld [vmem:[#allocation2] sm:$0xff]  ;;  %s2695_s29 = sld [smem:[#allocation38_spill]] }
  0x7d   : > { %v790_v4 = vpack.c.bf16 %v2454_v3, %v2454_v3 }
  0x7f   : > { %1587 = vmatmul.msk.bf16.vlgmr.msra.gmra.mxu0 %vm811_vm1, %v790_v4 }
  0x81   : > { %s2694_s1 = scalar_lea.vmem %s2693_s15, %s2405_s6 }
  0x82   : > { %s2696_s24 = scalar_lea.vmem %s2695_s29, %s2405_s6 }
  0xfc   : > { %v824_v6 = vpop.f32.mrf.mxu0 }
  0xfd   : > { %v825_v7 = vadd.f32 %v1781_v5, %v824_v6 }
  0xff   : > { %835 = vrot.lane.b32.xlu1 %v825_v7, %s2098_s21  ;;  %829 = vrot.lane.b32.xlu0 %v825_v7, %s2099_s18  ;;  %v838_v9 = vpack.c.bf16 %v825_v7, %v825_v7 }
 0x101   : > { %v847_v10 = vunpack.c.l.b16 %v838_v9 }
 0x103   : > { %v2461_v11 = vpack.c.b16 %v847_v10, %v847_v10 }
 0x104   : > { %v826_v8 = vpop.f32.mrf.mxu0 }
 0x107   : > { %832 = vrot.lane.b32.xlu0 %v825_v7, %s2100_s25 }
 0x10f   : > { %849 = vrot.lane.b32.xlu0 %v2461_v11, %s2101_s28 }
 0x171   : > { %v830_v12 = vpop.permute.xlu0 %829  ;;  %v836_v18 = vpop.permute.xlu1 %835 }
 0x172   : > { %v839_v13 = vpack.c.bf16 %v830_v12, %v830_v12  ;;  %v841_v20 = vpack.c.bf16 %v836_v18, %v836_v18 }
 0x174   : > { %v872_v14 = vunpack.c.l.b16 %v839_v13  ;;  %v920_v23 = vunpack.c.l.b16 %v841_v20 }
 0x176   : > { %v2464_v15 = vpack.c.b16 %v872_v14, %v872_v14  ;;  %v921_v25 = vpack.c.b16 %v920_v23, %v920_v23 }
 0x178   : > { %874 = vrot.lane.b32.xlu1 %v2464_v15, %s2101_s28 }
 0x179   : > { %v833_v16 = vpop.permute.xlu0 %832 }
 0x17a   : > { %v840_v17 = vpack.c.bf16 %v833_v16, %v833_v16 }
 0x17c   : > { %v896_v19 = vunpack.c.l.b16 %v840_v17 }
 0x17e   : > { %v2467_v21 = vpack.c.b16 %v896_v19, %v896_v19 }
 0x180   : > { %898 = vrot.lane.b32.xlu2 %v2467_v21, %s2101_s28 }
 0x181   : > { %v850_v22 = vpop.permute.xlu0 %849 }
 0x182   : > { %v856_v24 = vsel %vm851_vm2, %v850_v22, 0 }
 0x183   : > { %865 = vmatpush.bf16.xpose.msra.mxu1 %v856_v24 }
 0x188   : > { %922 = vrot.lane.b32.xlu2 %v921_v25, %s2101_s28 }
 0x18a   : > { %1588 = vmatmul.msk.bf16.vlgmr.msra.gmra.mxu1 %vm851_vm2, %v838_v9 }
 0x1da   : > { %v899_v26 = vpop.permute.xlu2 %898 }
 0x1db   : > { %v904_v27 = vsel %vm851_vm2, %v899_v26, 0 }
 0x1dc   : > { %913 = vmatpush.bf16.xpose.msra.mxu3 %v904_v27 }
 0x1e2   : > { %v923_v28 = vpop.permute.xlu2 %922 }
 0x1e3   : > { %1590 = vmatmul.msk.bf16.vlgmr.msra.gmra.mxu3 %vm851_vm2, %v840_v17  ;;  %v928_v29 = vsel %vm851_vm2, %v923_v28, 0 }
 0x1e4   : > { %937 = vmatpush.bf16.xpose.msrb.mxu0 %v928_v29 }
 0x1ea   : > { %v875_v30 = vpop.permute.xlu1 %874 }
 0x1eb   : > { %1591 = vmatmul.msk.bf16.vlgmr.msrb.gmra.mxu0 %vm851_vm2, %v841_v20  ;;  %v880_v31 = vsel %vm851_vm2, %v875_v30, 0 }
 0x1ec   : > { %889 = vmatpush.bf16.xpose.msra.mxu2 %v880_v31 }
 0x1f3   : > { %1589 = vmatmul.msk.bf16.vlgmr.msra.gmra.mxu2 %vm851_vm2, %v839_v13 }
 0x207   : > { %v867_v32 = vpop.f32.mrf.mxu1 }
 0x208   : > { %v868_v41 = vadd.f32 %v1782_v34, %v867_v32 }
 0x20a   : > { %v943_v44 = vsel %vm851_vm2, %v868_v41, -inf }
 0x20f   : > { %v869_v33 = vpop.f32.mrf.mxu1 }
 0x266   : > { %v915_v35 = vpop.f32.mrf.mxu3 }
 0x267   : > { %v916_v36 = vadd.f32 %v1782_v34, %v915_v35 }
 0x268   : > { %v939_v37 = vpop.f32.mrf.mxu0 }
 0x269   : > { %v940_v38 = vadd.f32 %v1782_v34, %v939_v37  ;;  %v949_v39 = vsel %vm851_vm2, %v916_v36, -inf }
 0x26a   : > { %950 = vmax.xlane.f32.xlu2 %v949_v39  ;;  %v1642_v39 = vld [vmem:[%s2418_s22] sm:$0xff] }
 0x26b   : > { %v952_v40 = vsel %vm851_vm2, %v940_v38, -inf }
 0x26c   : > { %953 = vmax.xlane.f32.xlu0 %v952_v40 }
 0x26e   : > { %v917_v42 = vpop.f32.mrf.mxu3 }
 0x270   : > { %v941_v43 = vpop.f32.mrf.mxu0 }
 0x272   : > { %944 = vmax.xlane.f32.xlu2 %v943_v44 }
 0x276   : > { %v891_v45 = vpop.f32.mrf.mxu2 }
 0x277   : > { %v892_v46 = vadd.f32 %v1782_v34, %v891_v45 }
 0x279   : > { %v946_v47 = vsel %vm851_vm2, %v892_v46, -inf }
 0x27a   : > { %947 = vmax.xlane.f32.xlu1 %v946_v47  ;;  %v1783_v47 = vld [vmem:[%s2694_s1] ss:$0 sm:$0xff] }
 0x27e   : > { %v893_v48 = vpop.f32.mrf.mxu2 }
 0x2dd   : > { %v951_v49 = vpop.xlane.xlu2 %950 }
 0x2de   : > { %v957_v50 = vsub.f32 %v916_v36, %v951_v49 }
 0x2df   : > { %v954_v51 = vpop.xlane.xlu0 %953 }
 0x2e0   : > { %v963_v52 = vmul.f32 1.442695, %v957_v50  ;;  %v958_v53 = vsub.f32 %v940_v38, %v954_v51  ;;  %v1643_v38 = vld [vmem:[%s2418_s22 + $0x8] sm:$0xff] }
 0x2e2   : > { %1790 = vpow2.f32 %v963_v52  ;;  %v965_v54 = vmul.f32 1.442695, %v958_v53  ;;  %v2106_v53 = vmov 32.0  }
 0x2e4   : > { %1792 = vpow2.f32 %v965_v54 }
 0x2e5   : > { %v945_v0 = vpop.xlane.xlu2 %944 }
 0x2e6   : > { %v955_v1 = vsub.f32 %v868_v41, %v945_v0  ;;  %v1645_v0 = vld [vmem:[%s2427_s3 + $0x8] sm:$0xff] }
 0x2e8   : > { %v1791_v55 = vpop.eup %1790  ;;  %v959_v2 = vmul.f32 1.442695, %v955_v1  ;;  %v1644_v1 = vld [vmem:[%s2427_s3] sm:$0xff] }
 0x2e9   : > { %v973_v56 = vsel %vm851_vm2, %v1791_v55, 0.0 }
 0x2ea   : > { %v1793_v57 = vpop.eup %1792  ;;  %974 = vadd.xlane.f32.xlu2 %v973_v56 }
 0x2eb   : > { %v976_v58 = vsel %vm851_vm2, %v1793_v57, 0.0 }
 0x2ec   : > { %977 = vadd.xlane.f32.xlu0 %v976_v58 }
 0x2ed   : > { %v948_v59 = vpop.xlane.xlu1 %947 }
 0x2ee   : > { %v956_v60 = vsub.f32 %v892_v46, %v948_v59 }
 0x2f0   : > { %v961_v61 = vmul.f32 1.442695, %v956_v60 }
 0x2f2   : > { %1794 = vpow2.f32 %v961_v61 }
 0x2f3   : > { %1796 = vpow2.f32 %v959_v2  ;;  %v1649_v2 = vld [vmem:[%s2437_s16 + $0x18] sm:$0xff] }
 0x2f8   : > { %v1795_v62 = vpop.eup %1794 }
 0x2f9   : > { %v970_v63 = vsel %vm851_vm2, %v1795_v62, 0.0  ;;  %v1797_v4 = vpop.eup %1796 }
 0x2fa   : > { %971 = vadd.xlane.f32.xlu1 %v970_v63  ;;  %v967_v5 = vsel %vm851_vm2, %v1797_v4, 0.0 }
 0x300   : > { %1055 = vrot.lane.b32.xlu0 %v921_v25, %s2102_s5 }
 0x302   : > { %1034 = vrot.lane.b32.xlu2 %v2467_v21, %s2102_s5 }
 0x308   : > { %991 = vrot.lane.b32.xlu0 %v2461_v11, %s2102_s5 }
 0x313   : > { %1013 = vrot.lane.b32.xlu1 %v2464_v15, %s2102_s5  ;;  %s2701_s5 = sld [smem:[#allocation21_spill]] }
 0x319   : > { %p1631_p8 = scmp.ne.s32.totalorder %s2701_s5, 1 }
 0x33d   : > { %968 = vadd.xlane.f32.xlu1 %v967_v5 }
 0x35d   : > { %v975_v6 = vpop.xlane.xlu2 %974 }
 0x35e   : > { %1798 = vrcp.f32 %v975_v6  ;;  %v1648_v6 = vld [vmem:[%s2437_s16 + $0x10] sm:$0xff] }
 0x35f   : > { %v978_v9 = vpop.xlane.xlu0 %977 }
 0x360   : > { %1800 = vrcp.f32 %v978_v9 }
 0x364   : > { %v1799_v7 = vpop.eup %1798 }
 0x365   : > { %v985_v8 = vmul.f32 %v1799_v7, %v1791_v55  ;;  %v1035_v10 = vpop.permute.xlu2 %1034 }
 0x366   : > { %v1040_v12 = vsel %vm996_vm3, %v1035_v10, 0  ;;  %v1801_v13 = vpop.eup %1800 }
 0x367   : > { %1049 = vmatpush.bf16.msrb.mxu3 %v1040_v12  ;;  %v989_v11 = vpack.c.bf16 %v985_v8, %v985_v8  ;;  %v986_v14 = vmul.f32 %v1801_v13, %v1793_v57 }
 0x369   : > { %v990_v17 = vpack.c.bf16 %v986_v14, %v986_v14  ;;  %v1784_v14 = vld [vmem:[%s2696_s24] ss:$0 sm:$0xff] }
 0x36a   : > { %1594 = vmatmul.msk.bf16.vlgmr.msrb.gmra.mxu3 %vm851_vm2, %v989_v11 }
 0x36b   : > { %1253 = vmatpush.bf16.msra.mxu3 %v1649_v2 }
 0x36d   : > { %v972_v18 = vpop.xlane.xlu1 %971 }
 0x36e   : > { %1802 = vrcp.f32 %v972_v18 }
 0x36f   : > { %1254 = vmatpush.bf16.msra.mxu3 %v1648_v6 }
 0x372   : > { %v1056_v15 = vpop.permute.xlu0 %1055 }
 0x373   : > { %v1061_v16 = vsel %vm996_vm3, %v1056_v15, 0 }
 0x374   : > { %1070 = vmatpush.bf16.msra.mxu0 %v1061_v16  ;;  %v1803_v21 = vpop.eup %1802  ;;  %v1785_v16 = vld [vmem:[%s2697_s11] ss:$0 sm:$0xff] }
 0x375   : > { %v984_v22 = vmul.f32 %v1803_v21, %v1795_v62  ;;  %v1647_v21 = vld [vmem:[%s2437_s16 + $0x8] sm:$0xff] }
 0x376   : > { %1255 = vmatpush.bf16.msra.mxu3 %v1647_v21 }
 0x377   : > { %1595 = vmatmul.msk.bf16.vlgmr.msra.gmra.mxu0 %vm851_vm2, %v990_v17  ;;  %v988_v25 = vpack.c.bf16 %v984_v22, %v984_v22  ;;  %v1646_v22 = vld [vmem:[%s2437_s16] sm:$0xff] }
 0x37a   : > { %v992_v19 = vpop.permute.xlu0 %991  ;;  %1256 = vmatpush.bf16.msra.mxu3 %v1646_v22 }
 0x37b   : > { %v998_v20 = vsel %vm996_vm3, %v992_v19, 0 }
 0x37c   : > { %1007 = vmatpush.bf16.msrb.mxu1 %v998_v20 }
 0x380   : > { %1123 = vmatpush.bf16.msra.mxu1 %v1643_v38 }
 0x384   : > { %1124 = vmatpush.bf16.msra.mxu1 %v1642_v39 }
 0x385   : > { %v1014_v23 = vpop.permute.xlu1 %1013 }
 0x386   : > { %v1019_v24 = vsel %vm996_vm3, %v1014_v23, 0  ;;  %v1786_v23 = vld [vmem:[%s769_s26] ss:$0 sm:$0xff] }
 0x387   : > { %1028 = vmatpush.bf16.msrb.mxu2 %v1019_v24 }
 0x38a   : > { %1593 = vmatmul.msk.bf16.vlgmr.msrb.gmra.mxu2 %vm851_vm2, %v988_v25 }
 0x38b   : > { %1200 = vmatpush.bf16.msra.mxu2 %v1645_v0 }
 0x38f   : > { %1201 = vmatpush.bf16.msra.mxu2 %v1644_v1 }
 0x3b0   : > { %v969_v26 = vpop.xlane.xlu1 %968 }
 0x3b1   : > { %1804 = vrcp.f32 %v969_v26 }
 0x3b2   : > { %1806 = vrcp.f32 %v2106_v53 }
 0x3b7   : > { %v1805_v27 = vpop.eup %1804 }
 0x3b8   : > { %v983_v28 = vmul.f32 %v1805_v27, %v1797_v4  ;;  %v1807_v54 = vpop.eup %1806 }
 0x3b9   : > { %v1135_v55 = vmul.f32 32.0, %v1807_v54  ;;  %vm1139_vm6 = vweird.f32 %v1807_v54 }
 0x3ba   : > { %v987_v29 = vpack.c.bf16 %v983_v28, %v983_v28 }
 0x3bb   : > { %v1136_v56 = vsub.f32 1.0, %v1135_v55 }
 0x3bc   : > { %1592 = vmatmul.msk.bf16.vlgmr.msrb.gmra.mxu1 %vm851_vm2, %v987_v29  ;;  %v1787_v29 = vld [vmem:[%s777_s20] ss:$0 sm:$0xff] }
 0x3bd   : > { %v1137_v57 = vmul.f32 %v1807_v54, %v1136_v56 }
 0x3bf   : > { %v1138_v58 = vadd.f32 %v1807_v54, %v1137_v57 }
 0x3c1   : > { %v1140_v59 = vsel %vm1139_vm6, %v1807_v54, %v1138_v58 }
 0x3ed   : > { %v1051_v30 = vpop.f32.mrf.mxu3 }
 0x3ee   : > { %1081 = vrot.lane.b32.xlu0 %v1051_v30, %s2103_s27 }
 0x3f4   : > { %v1072_v31 = vpop.f32.mrf.mxu0 }
 0x3f5   : > { %v1053_v32 = vpop.f32.mrf.mxu3 }
 0x3fc   : > { %v1074_v33 = vpop.f32.mrf.mxu0 }
 0x40d   : > { %v1030_v34 = vpop.f32.mrf.mxu2 }
 0x40e   : > { %1077 = vrot.lane.b32.xlu2 %v1030_v34, %s2104_s14 }
 0x415   : > { %v1032_v35 = vpop.f32.mrf.mxu2 }
 0x416   : > { %1085 = vrot.lane.b32.xlu2 %v1072_v31, %s2105_s7 }
 0x439   : > { %v1009_v36 = vpop.f32.mrf.mxu1 }
 0x441   : > { %v1011_v37 = vpop.f32.mrf.mxu1 }
 0x460   : > { %v1082_v42 = vpop.permute.xlu0 %1081 }
 0x468   : > { %v1078_v40 = vpop.permute.xlu2 %1077 }
 0x469   : > { %v1088_v41 = vsel %vm851_vm2, %v1009_v36, %v1078_v40 }
 0x46a   : > { %v1090_v44 = vsel %vm1089_vm4, %v1088_v41, %v1082_v42 }
 0x470   : > { %v1086_v43 = vpop.permute.xlu2 %1085 }
 0x471   : > { %v1092_v45 = vsel %vm1091_vm5, %v1090_v44, %v1086_v43 }
 0x472   : > { %v1093_v46 = vpack.c.bf16 %v1092_v45, %v1092_v45 }
 0x474   : > { %1604 = vmatmul.msk.bf16.vlgmr.msra.gmra.mxu1 %vm811_vm1, %v1093_v46 }
 0x4f1   : > { %v1126_v48 = vpop.f32.mrf.mxu1 }
 0x4f2   : > { %v1127_v49 = vadd.f32 %v1783_v47, %v1126_v48 }
 0x4f4   : > { %v1130_v50 = vadd.f32 %v1127_v49, %v2454_v3  ;;  %v1788_v49 = vld [vmem:[%s780_s9] ss:$0 sm:$0xff] }
 0x4f6   : > { %v1131_v51 = vsel %vm811_vm1, %v1130_v50, 0.0 }
 0x4f7   : > { %1132 = vadd.xlane.f32.xlu0 %v1131_v51  ;;  %v1789_v51 = vld [vmem:[%s649_s0] ss:$0 sm:$0xff] }
 0x4f9   : > { %v1128_v52 = vpop.f32.mrf.mxu1 }
 0x56a   : > { %v1133_v60 = vpop.xlane.xlu0 %1132 }
 0x56b   : > { %v1141_v61 = vmul.f32 %v1140_v59, %v1133_v60 }
 0x56d   : > { %v1142_v3 = vsub.f32 %v1130_v50, %v1141_v61 }
 0x56f   : > { %v1143_v62 = vmul.f32 %v1142_v3, %v1142_v3 }
 0x571   : > { %v1144_v63 = vsel %vm811_vm1, %v1143_v62, 0.0 }
 0x572   : > { %1145 = vadd.xlane.f32.xlu2 %v1144_v63 }
 0x5e5   : > { %v1146_v4 = vpop.xlane.xlu2 %1145 }
 0x5e6   : > { %v1147_v5 = vmul.f32 %v1146_v4, %v1140_v59 }
 0x5e8   : > { %v1148_v7 = vadd.f32 1e-05, %v1147_v5 }
 0x5ea   : > { %1808 = vrsqrt.f32 %v1148_v7  ;;  %vm1155_vm8 = vweird.f32 %v1148_v7 }
 0x5f0   : > { %v1809_v8 = vpop.eup %1808 }
 0x5f1   : > { %v1150_v9 = vmul.f32 %v1809_v8, %v1148_v7  ;;  %vm1156_vm7 = vweird.f32 %v1809_v8 }
 0x5f2   : > { %vm1157_vm9 = vmor %vm1155_vm8, %vm1156_vm7 }
 0x5f3   : > { %v1151_v10 = vmul.f32 %v1809_v8, %v1150_v9 }
 0x5f5   : > { %v1152_v12 = vmul.f32 0.5, %v1151_v10 }
 0x5f7   : > { %v1153_v11 = vsub.f32 1.5, %v1152_v12 }
 0x5f9   : > { %v1154_v13 = vmul.f32 %v1809_v8, %v1153_v11 }
 0x5fb   : > { %v1158_v15 = vsel %vm1157_vm9, %v1809_v8, %v1154_v13 }
 0x5fc   : > { %v1159_v17 = vmul.f32 %v1158_v15, %v1142_v3 }
 0x5fe   : > { %v1164_v18 = vmul.f32 %v1784_v14, %v1159_v17 }
 0x600   : > { %v1169_v19 = vadd.f32 %v1785_v16, %v1164_v18 }
 0x602   : > { %v1170_v20 = vpack.c.bf16 %v1169_v19, %v1169_v19 }
 0x604   : > { %1613 = vmatmul.msk.bf16.vlgmr.msra.gmra.mxu2 %vm811_vm1, %v1170_v20 }
 0x687   : > { %v1203_v24 = vpop.f32.mrf.mxu2 }
 0x688   : > { %v1204_v25 = vadd.f32 %v1786_v23, %v1203_v24 }
 0x68a   : > { %v1207_v26 = vmax.f32 %v1204_v25, 0.0 }
 0x68c   : > { %v1208_v27 = vpack.c.bf16 %v1207_v26, %v1207_v26 }
 0x68e   : > { %1630 = vmatmul.msk.bf16.vlgmr.msra.gmra.mxu3 %vm1245_vm10, %v1208_v27 }
 0x68f   : > { %v1205_v28 = vpop.f32.mrf.mxu2 }
 0x711   : > { %v1258_v30 = vpop.f32.mrf.mxu3 }
 0x712   : > { %v1259_v31 = vadd.f32 %v1787_v29, %v1258_v30 }
 0x714   : > { %v1262_v32 = vadd.f32 %v1259_v31, %v1169_v19 }
 0x716   : > { %v1263_v33 = vsel %vm811_vm1, %v1262_v32, 0.0 }
 0x717   : > { %1264 = vadd.xlane.f32.xlu1 %v1263_v33 }
 0x719   : > { %v1260_v34 = vpop.f32.mrf.mxu3 }
 0x78a   : > { %v1265_v35 = vpop.xlane.xlu1 %1264 }
 0x78b   : > { %v1266_v36 = vmul.f32 %v1265_v35, %v1140_v59 }
 0x78d   : > { %v1267_v37 = vsub.f32 %v1262_v32, %v1266_v36 }
 0x78f   : > { %v1268_v38 = vmul.f32 %v1267_v37, %v1267_v37 }
 0x791   : > { %v1269_v39 = vsel %vm811_vm1, %v1268_v38, 0.0 }
 0x792   : > { %1270 = vadd.xlane.f32.xlu1 %v1269_v39 }
 0x805   : > { %v1271_v40 = vpop.xlane.xlu1 %1270 }
 0x806   : > { %v1272_v41 = vmul.f32 %v1271_v40, %v1140_v59 }
 0x808   : > { %v1273_v42 = vadd.f32 1e-05, %v1272_v41 }
 0x80a   : > { %1810 = vrsqrt.f32 %v1273_v42  ;;  %vm1280_vm12 = vweird.f32 %v1273_v42 }
 0x810   : > { %v1811_v43 = vpop.eup %1810 }
 0x811   : > { %v1275_v44 = vmul.f32 %v1811_v43, %v1273_v42  ;;  %vm1281_vm11 = vweird.f32 %v1811_v43 }
 0x812   : > { %vm1282_vm13 = vmor %vm1280_vm12, %vm1281_vm11 }
 0x813   : > { %v1276_v45 = vmul.f32 %v1811_v43, %v1275_v44 }
 0x815   : > { %v1277_v46 = vmul.f32 0.5, %v1276_v45 }
 0x817   : > { %v1278_v47 = vsub.f32 1.5, %v1277_v46 }
 0x819   : > { %v1279_v48 = vmul.f32 %v1811_v43, %v1278_v47 }
 0x81b   : > { %v1283_v50 = vsel %vm1282_vm13, %v1811_v43, %v1279_v48 }
 0x81c   : > { %v1284_v52 = vmul.f32 %v1283_v50, %v1267_v37 }
 0x81e   : > { %v1289_v53 = vmul.f32 %v1788_v49, %v1284_v52  ;;  %1299 = sbr.rel (%p1631_p8) target bundleno = 2084 (0x824), region = 104 }
 0x820   : > { %v1294_v54 = vadd.f32 %v1789_v51, %v1289_v53 }
 0x822   : > { %1295 = vst.msk [vmem:[#allocation2] sm:$0xff] %vm811_vm1, %v1294_v54 }
 0x823   : > { %1300 = vst.msk [vmem:[%s2450_s19] sm:$0xff] %vm811_vm1, %v1294_v54 }
 0x824 PF: > { %s2702_s27 = sld [smem:[#allocation22_spill]]  ;;  %s1314_s8 = sshll.u32 %s2450_s19, 4  ;;  %s1315_s8 = int_to_ptr.vmem [resolvable:$true] %s1314_s8 }
 0x825   : > { %s2703_s6 = sld [smem:[#allocation25_spill]]  ;;  %s1302_s15 = scalar_lea.sflag [#allocation5], %s2372_s2 }
 0x826   : > { %s2704_s0 = sld [smem:[#allocation46_spill]] }
 0x82a   : > { %s1633_s9 = sshll.u32 %s2702_s27, 3 }
 0x82b   : > { %p2705_p10 = scmp.ne.s32.totalorder %s2703_s6, 0 }
 0x82c   : > { %s1312_s7 = scalar_lea.hbm %s2704_s0, %s1633_s9  ;;  %s1982_s24 = scalar_lea.hbm %s2704_s0, 16 }
 0x82d   : > { %s1316_s12 = sshll.u32 %s1312_s7, 4  ;;  %s1317_s12 = int_to_ptr.hbm [resolvable:$true] %s1316_s12 }
 0x82e   : > { %s1976_s1 = sshra.s32 %s1317_s12, 4  ;;  %s1977_s1 = int_to_ptr.hbm [resolvable:$true] %s1976_s1 }
 0x82f   : > { %s1978_s3 = scalar_lea.hbm %s1977_s1, 8  ;;  %p1983_p2 = scmp.lt.s32.totalorder %s1977_s1, %s2704_s0 }
 0x830   : > { %p1979_p9 = scmp.ne.s32.totalorder %s1977_s1, %s1978_s3  ;;  %p1984_p4 = scmp.lt.s32.totalorder %s1982_s24, %s1978_s3 }
 0x832   : > { %p1980_p11 = pnand %p1979_p9, %p2705_p10  ;;  %p1985_p5 = por %p1984_p4, %p1983_p2 }
 0x834   : > { %p1981_p0 = pneg %p1980_p11 }
 0x836   : > { %p1986_p7 = pnand %p1985_p5, %p1981_p0 }
 0x838   : > { %1989 = shalt.err (!%p1986_p7)
}
 0x839   : > { %1660 = dma.vmem_to_hbm [thread:$0]  (%p2705_p10), %s1315_s8, 128, %s1317_s12, %s1302_s15  }
 0x83a PF: > { %s2706_s2 = sld [smem:[#allocation19_spill]]  ;;  %p1683_p12 = scmp.ge.s32.totalorder %s2096_s23, 2 }
 0x83b   : > { %s2707_s19 = sld [smem:[#allocation26_spill]] }
 0x840   : > { %s1328_s21 = sand.u32 1, %s2706_s2  }
 0x841   : > { %p2708_p13 = scmp.ne.s32.totalorder %s2707_s19, 0  ;;  %s1329_s18 = scalar_lea.sflag [#allocation5], %s1328_s21 }
 0x843   : > { %p1679_p1 = pnand %p1683_p12, %p2708_p13 }
 0x845   : > { %p1680_p3 = pneg %p1679_p1 }
 0x847   : > { %2051 = dma.done.wait (%p1680_p3), %s1329_s18, 128  }
 0x848   : > { %2053 = vsyncadd (%p1680_p3), %s1329_s18, 4294967168  ;;  %s36_s23 = sadd.s32 1, %s2096_s23   ;;  %s2709_s25 = sld [smem:[#allocation18_spill]] }
 0x849   : > { %p33_p6 = scmp.ge.s32.totalorder %s36_s23, 6   ;;  %s2710_s15 = sld [smem:[#allocation30_spill]] }
 0x84a   : > { %s2711_s28 = sld [smem:[#allocation20_spill]]  ;;  %s2717_s29 = smov %s2060_s30 }
 0x84b   : > { %s2712_s18 = sld [smem:[#allocation31_spill]]  ;;  %s2719_s16 = smov %s2072_s17 }
 0x84c   : > { %s2713_s19 = sld [smem:[#allocation23_spill]]  ;;  %35 = sbr.rel (!%p33_p6) target bundleno = 29 (0x1d), region = 204 }
 0x84d   : > { %s2714_s20 = sld [smem:[#allocation24_spill]] }
 0x84e   : > { %s2715_s21 = sld [smem:[#allocation27_spill]]  ;;  %s2718_s30 = smov %s2709_s25 }
 0x84f   : > { %s2716_s22 = sld [smem:[#allocation29_spill]] }
 0x850   : > { %s2720_s17 = smov %s2711_s28 }
 0x851   :  { %1335 = vsyncpa [#allocation4], 1 }
 0x852   :  { %1337 = vsyncpa [#allocation4 + $0x1], 1 }
 0x853   :  { %1338 = vsyncpa [#allocation7], 1 }
 0x854   :  { %1340 = vsyncpa [#allocation7 + $0x1], 1 }
 0x855   :  { %1341 = vsyncpa [#allocation10], 1 }
 0x856   :  { %1343 = vsyncpa [#allocation10 + $0x1], 1 }
 0x857   :  { %1344 = vsyncpa [#allocation5], 1 }
 0x858   :  { %1346 = vsyncpa [#allocation5 + $0x1], 1 }

</bundles_post_ra>
